<compile_context>
chip_gen: v6e
topology: v6e:2x2x1
jax: 0.10.0
libtpu: 0.0.40
codegen_flags: <defaults>
</compile_context>

<pallas_src>
import functools

import jax
import jax.numpy as jnp
from jax.experimental import pallas as pl
from jax.experimental.pallas import tpu as pltpu


def _leaky_relu(v, slope=0.2):
    # max(v, slope*v) == LeakyReLU for 0 < slope < 1 (2 VPU ops vs 3 for where()).
    return jnp.maximum(v, slope * v)


def speaker_encoder_kernel(x_ref, w1_ref, b1_ref, w2_ref, b2_ref,
                           wf_ref, b3_ref, o_ref):
    # x_ref: (1, n_in, TN) channel-major tile -> tokens live on the 128-lane axis.
    x = x_ref[0]                                                     # (n_in, TN) f32

    # encoder conv1 (1x1) + LeakyReLU(0.2):  (n_hidden, n_in) @ (n_in, TN)
    h = jnp.dot(w1_ref[...], x, preferred_element_type=jnp.float32) + b1_ref[...]
    h = _leaky_relu(h)

    # encoder conv2 (1x1):  (E, n_hidden) @ (n_hidden, TN); softmax over the channel
    # (sublane) axis == PyTorch Softmax(dim=1) on NCT. bf16 operands, f32 accumulate.
    s = jnp.dot(w2_ref[...], h.astype(w2_ref.dtype),
                preferred_element_type=jnp.float32) + b2_ref[...]
    s = s - jnp.max(s, axis=0, keepdims=True)
    p = jnp.exp(s)
    a = p * pl.reciprocal(jnp.sum(p, axis=0, keepdims=True), approx=True)

    # fused (speaker-embedding @ projection) 1x1 conv + LeakyReLU(0.2):
    #   (n_out, E) @ (E, TN) + b3
    out = jnp.dot(wf_ref[...], a.astype(wf_ref.dtype),
                  preferred_element_type=jnp.float32) + b3_ref[...]
    o_ref[0] = _leaky_relu(out).astype(o_ref.dtype)


def weight_norm_conv1x1(v, g):
    # v: (out, in, 1), g: (out, 1, 1); norm over all dims except dim 0 (PyTorch default).
    norm = jnp.sqrt(jnp.sum(v * v, axis=(1, 2), keepdims=True))
    w = g * v / norm
    return w[:, :, 0]  # (out, in)


def _pick_token_tile(T, B, tn_max):
    """Pad T to the next multiple of 128 and pick a token tile that divides it."""
    t_pad = pl.cdiv(T, 128) * 128
    k = t_pad // 128
    g_max = max(1, min(k, tn_max // 128))
    # With a single batch, prefer >= 2 token tiles so both v7x TensorCores get work.
    if B == 1 and k >= 2:
        g_max = min(g_max, max(1, k // 2))
    g = g_max
    while k % g != 0:
        g -= 1
    return t_pad, g * 128


@functools.partial(jax.jit, static_argnames=("tn", "out_dtype"))
def speaker_encoder_forward(x_nct, params, tn=2048, out_dtype=jnp.float32):
    """x_nct: (B, n_in, T) float32 (NCT layout). Returns (B, n_out, T) out_dtype."""
    B, n_in, T = x_nct.shape
    w1 = weight_norm_conv1x1(params["enc1_v"], params["enc1_g"])     # (n_hidden, n_in)
    w2 = weight_norm_conv1x1(params["enc2_v"], params["enc2_g"])     # (E, n_hidden)
    w3 = weight_norm_conv1x1(params["proj_v"], params["proj_g"])     # (n_out, n_hidden)
    emb = params["spk_embeddings"]                                   # (E, n_hidden)

    n_hidden = w1.shape[0]
    E = w2.shape[0]
    n_out = w3.shape[0]

    # Pre-fold the post-softmax linear chain:  w3 @ (emb^T @ a) == (w3 @ emb^T) @ a.
    w_fused = w3 @ emb.T                                             # (n_out, E)

    # bf16 operands for the 2nd/3rd dots (tiny, resident weights; f32 accumulation).
    w2_s = w2.astype(jnp.bfloat16)
    wf_s = w_fused.astype(jnp.bfloat16)

    # Biases as columns so they broadcast along the token (lane) axis in-kernel.
    b1 = params["enc1_b"][:, None]                                   # (n_hidden, 1)
    b2 = params["enc2_b"][:, None]                                   # (E, 1)
    b3 = params["proj_b"][:, None]                                   # (n_out, 1)

    # Minimal lane padding: T -> next multiple of 128; token tile divides t_pad.
    t_pad, tn_eff = _pick_token_tile(T, B, tn)
    if t_pad != T:
        x_in = jnp.pad(x_nct, ((0, 0), (0, 0), (0, t_pad - T)))
    else:
        x_in = x_nct  # no HBM pad copy, no de-pad slice

    n_tok = B * t_pad
    cost = pl.CostEstimate(
        flops=2 * n_tok * (n_in * n_hidden + n_hidden * E + E * n_out),
        transcendentals=n_tok * E,
        bytes_accessed=(x_in.size * x_in.dtype.itemsize
                        + n_tok * n_out * jnp.dtype(out_dtype).itemsize
                        + 4 * (w1.size + n_hidden + E + n_out)
                        + 2 * (w2.size + w_fused.size)),
    )

    full = lambda b, t: (0, 0)  # weights/biases resident across all grid steps

    out_pad = pl.pallas_call(
        speaker_encoder_kernel,
        out_shape=jax.ShapeDtypeStruct((B, n_out, t_pad), out_dtype),
        grid_spec=pltpu.PrefetchScalarGridSpec(
            num_scalar_prefetch=0,
            grid=(B, t_pad // tn_eff),
            in_specs=[
                pl.BlockSpec((1, n_in, tn_eff), lambda b, t: (b, 0, t)),
                pl.BlockSpec((n_hidden, n_in), full),
                pl.BlockSpec((n_hidden, 1), full),
                pl.BlockSpec((E, n_hidden), full),
                pl.BlockSpec((E, 1), full),
                pl.BlockSpec((n_out, E), full),
                pl.BlockSpec((n_out, 1), full),
            ],
            out_specs=pl.BlockSpec((1, n_out, tn_eff), lambda b, t: (b, 0, t)),
        ),
        compiler_params=pltpu.CompilerParams(
            dimension_semantics=("parallel", "parallel")),
        cost_estimate=cost,
    )(x_in, w1, b1, w2_s, b2, wf_s, b3)

    if t_pad != T:
        out_pad = out_pad[:, :, :T]
    return out_pad


def make_params(key, n_in, n_out, n_hidden, emb_size):
    ks = jax.random.split(key, 8)
    return {
        "spk_embeddings": 0.5 * jax.random.normal(ks[0], (emb_size, n_hidden), jnp.float32),
        "enc1_v": jax.random.normal(ks[1], (n_hidden, n_in, 1), jnp.float32) * 0.2,
        "enc1_g": jnp.abs(jax.random.normal(ks[2], (n_hidden, 1, 1), jnp.float32)) + 0.5,
        "enc1_b": jax.random.normal(ks[3], (n_hidden,), jnp.float32) * 0.1,
        "enc2_v": jax.random.normal(ks[4], (emb_size, n_hidden, 1), jnp.float32) * 0.2,
        "enc2_g": jnp.abs(jax.random.normal(ks[5], (emb_size, 1, 1), jnp.float32)) + 0.5,
        "enc2_b": jax.random.normal(ks[6], (emb_size,), jnp.float32) * 0.1,
        "proj_v": jax.random.normal(ks[7], (n_out, n_hidden, 1), jnp.float32) * 0.2,
        "proj_g": jnp.ones((n_out, 1, 1), jnp.float32),
        "proj_b": jnp.zeros((n_out,), jnp.float32),
    }


def reference_forward(x_nct, params):
    # Pure-JAX f32 reference of the PyTorch forward (NCT layout throughout).
    w1 = weight_norm_conv1x1(params["enc1_v"], params["enc1_g"])
    w2 = weight_norm_conv1x1(params["enc2_v"], params["enc2_g"])
    w3 = weight_norm_conv1x1(params["proj_v"], params["proj_g"])
    h = jnp.einsum("oc,bct->bot", w1, x_nct) + params["enc1_b"][None, :, None]
    h = jnp.where(h > 0, h, 0.2 * h)
    s = jnp.einsum("oc,bct->bot", w2, h) + params["enc2_b"][None, :, None]
    a = jax.nn.softmax(s, axis=1)                       # softmax over channel dim
    e = jnp.einsum("bet,eh->bht", a, params["spk_embeddings"])
    o = jnp.einsum("oc,bct->bot", w3, e) + params["proj_b"][None, :, None]
    return jnp.where(o > 0, o, 0.2 * o)


if __name__ == "__main__":
    n_in_channels, n_out_channels = 8, 8
    n_hidden_channels, embedding_size = 32, 16
    B, T = 2, 16

    key = jax.random.PRNGKey(0)
    kx, kp = jax.random.split(key)
    x = jax.random.normal(kx, (B, n_in_channels, T), jnp.float32)
    params = make_params(kp, n_in_channels, n_out_channels,
                         n_hidden_channels, embedding_size)

    out = speaker_encoder_forward(x, params)
    out = jax.block_until_ready(out)

    ref = reference_forward(x, params)
    assert out.shape == (B, n_out_channels, T)
    # Tolerance covers bf16 operands in the 2nd/3rd dots + the approx reciprocal in
    # the softmax denominator (attention rows are not *exactly* a probability simplex).
    assert jnp.allclose(out, ref, atol=2e-2, rtol=2e-2), "mismatch vs reference"

    print("KERNEL_OK")
</pallas_src>

<mosaic_0001>
module attributes {stable_mosaic.version = 11 : i64} {
  func.func @speaker_encoder_kernel(%arg0: i32, %arg1: i32, %arg2: memref<1x8x128xf32, #tpu.memory_space<vmem>>, %arg3: memref<32x8xf32, #tpu.memory_space<vmem>>, %arg4: memref<32x1xf32, #tpu.memory_space<vmem>>, %arg5: memref<16x32xbf16, #tpu.memory_space<vmem>>, %arg6: memref<16x1xf32, #tpu.memory_space<vmem>>, %arg7: memref<8x16xbf16, #tpu.memory_space<vmem>>, %arg8: memref<8x1xf32, #tpu.memory_space<vmem>>, %arg9: memref<1x8x128xf32, #tpu.memory_space<vmem>>) attributes {dimension_semantics = [#tpu.dimension_semantics<parallel>, #tpu.dimension_semantics<parallel>], iteration_bounds = array<i64: 2, 1>, scalar_prefetch = 0 : i64, scratch_operands = 0 : i64, tpu.core_type = #tpu.core_type<tc>, window_params = [{transform_indices = @transform_0, window_bounds = array<i64: 1, 8, 128>}, {pipeline_mode = #tpu.pipeline_mode<synchronous>, transform_indices = @transform_1, window_bounds = array<i64: 32, 8>}, {pipeline_mode = #tpu.pipeline_mode<synchronous>, transform_indices = @transform_2, window_bounds = array<i64: 32, 1>}, {pipeline_mode = #tpu.pipeline_mode<synchronous>, transform_indices = @transform_3, window_bounds = array<i64: 16, 32>}, {pipeline_mode = #tpu.pipeline_mode<synchronous>, transform_indices = @transform_4, window_bounds = array<i64: 16, 1>}, {pipeline_mode = #tpu.pipeline_mode<synchronous>, transform_indices = @transform_5, window_bounds = array<i64: 8, 16>}, {pipeline_mode = #tpu.pipeline_mode<synchronous>, transform_indices = @transform_6, window_bounds = array<i64: 8, 1>}, {transform_indices = @transform_7, window_bounds = array<i64: 1, 8, 128>}]} {
    %c0 = arith.constant 0 : index
    %c0_0 = arith.constant 0 : index
    %c0_1 = arith.constant 0 : index
    %0 = vector.load %arg2[%c0, %c0_0, %c0_1] : memref<1x8x128xf32, #tpu.memory_space<vmem>>, vector<1x8x128xf32>
    %1 = vector.shape_cast %0 : vector<1x8x128xf32> to vector<8x128xf32>
    %c0_2 = arith.constant 0 : index
    %c0_3 = arith.constant 0 : index
    %2 = vector.load %arg3[%c0_2, %c0_3] : memref<32x8xf32, #tpu.memory_space<vmem>>, vector<32x8xf32>
    %cst = arith.constant dense<0.000000e+00> : vector<32x128xf32>
    %3 = tpu.matmul %2, %1, %cst {dimension_numbers = #tpu.dot_dimension_numbers<[1], [0], [0], [1], [0, 0, 1, 1], [], []>} : vector<32x8xf32>, vector<8x128xf32>, vector<32x128xf32> -> vector<32x128xf32>
    %c0_4 = arith.constant 0 : index
    %c0_5 = arith.constant 0 : index
    %4 = vector.load %arg4[%c0_4, %c0_5] : memref<32x1xf32, #tpu.memory_space<vmem>>, vector<32x1xf32>
    %5 = vector.broadcast %4 : vector<32x1xf32> to vector<32x128xf32>
    %6 = arith.addf %3, %5 : vector<32x128xf32>
    %cst_6 = arith.constant 2.000000e-01 : f32
    %7 = vector.broadcast %cst_6 : f32 to vector<32x128xf32>
    %8 = arith.mulf %7, %6 : vector<32x128xf32>
    %9 = arith.maximumf %6, %8 : vector<32x128xf32>
    %c0_7 = arith.constant 0 : index
    %c0_8 = arith.constant 0 : index
    %10 = vector.load %arg5[%c0_7, %c0_8] : memref<16x32xbf16, #tpu.memory_space<vmem>>, vector<16x32xbf16>
    %11 = arith.truncf %9 : vector<32x128xf32> to vector<32x128xbf16>
    %cst_9 = arith.constant dense<0.000000e+00> : vector<16x128xf32>
    %12 = tpu.matmul %10, %11, %cst_9 {dimension_numbers = #tpu.dot_dimension_numbers<[1], [0], [0], [1], [0, 0, 1, 1], [], []>} : vector<16x32xbf16>, vector<32x128xbf16>, vector<16x128xf32> -> vector<16x128xf32>
    %c0_10 = arith.constant 0 : index
    %c0_11 = arith.constant 0 : index
    %13 = vector.load %arg6[%c0_10, %c0_11] : memref<16x1xf32, #tpu.memory_space<vmem>>, vector<16x1xf32>
    %14 = vector.broadcast %13 : vector<16x1xf32> to vector<16x128xf32>
    %15 = arith.addf %12, %14 : vector<16x128xf32>
    %cst_12 = arith.constant dense<0xFF800000> : vector<128xf32>
    %16 = vector.multi_reduction <maximumf>, %15, %cst_12 [0] : vector<16x128xf32> to vector<128xf32>
    %17 = vector.shape_cast %16 : vector<128xf32> to vector<1x128xf32>
    %18 = vector.broadcast %17 : vector<1x128xf32> to vector<16x128xf32>
    %19 = arith.subf %15, %18 : vector<16x128xf32>
    %20 = math.exp %19 : vector<16x128xf32>
    %cst_13 = arith.constant dense<0.000000e+00> : vector<128xf32>
    %21 = vector.multi_reduction <add>, %20, %cst_13 [0] : vector<16x128xf32> to vector<128xf32>
    %22 = vector.shape_cast %21 : vector<128xf32> to vector<1x128xf32>
    %23 = tpu.reciprocal %22 {approx = true} : vector<1x128xf32> -> vector<1x128xf32>
    %24 = vector.broadcast %23 : vector<1x128xf32> to vector<16x128xf32>
    %25 = arith.mulf %20, %24 : vector<16x128xf32>
    %c0_14 = arith.constant 0 : index
    %c0_15 = arith.constant 0 : index
    %26 = vector.load %arg7[%c0_14, %c0_15] : memref<8x16xbf16, #tpu.memory_space<vmem>>, vector<8x16xbf16>
    %27 = arith.truncf %25 : vector<16x128xf32> to vector<16x128xbf16>
    %cst_16 = arith.constant dense<0.000000e+00> : vector<8x128xf32>
    %28 = tpu.matmul %26, %27, %cst_16 {dimension_numbers = #tpu.dot_dimension_numbers<[1], [0], [0], [1], [0, 0, 1, 1], [], []>} : vector<8x16xbf16>, vector<16x128xbf16>, vector<8x128xf32> -> vector<8x128xf32>
    %c0_17 = arith.constant 0 : index
    %c0_18 = arith.constant 0 : index
    %29 = vector.load %arg8[%c0_17, %c0_18] : memref<8x1xf32, #tpu.memory_space<vmem>>, vector<8x1xf32>
    %30 = vector.broadcast %29 : vector<8x1xf32> to vector<8x128xf32>
    %31 = arith.addf %28, %30 : vector<8x128xf32>
    %cst_19 = arith.constant 2.000000e-01 : f32
    %32 = vector.broadcast %cst_19 : f32 to vector<8x128xf32>
    %33 = arith.mulf %32, %31 : vector<8x128xf32>
    %34 = arith.maximumf %31, %33 : vector<8x128xf32>
    %c0_20 = arith.constant 0 : index
    %c0_21 = arith.constant 0 : index
    %c0_22 = arith.constant 0 : index
    %35 = vector.load %arg9[%c0_20, %c0_21, %c0_22] : memref<1x8x128xf32, #tpu.memory_space<vmem>>, vector<1x8x128xf32>
    %36 = vector.shape_cast %35 : vector<1x8x128xf32> to vector<8x128xf32>
    %37 = vector.shape_cast %34 : vector<8x128xf32> to vector<1x8x128xf32>
    tpu.vector_store %arg9[%c0_20, %c0_21, %c0_22], %37 {strides = array<i32>} : memref<1x8x128xf32, #tpu.memory_space<vmem>>, vector<1x8x128xf32>,
    return
  }
  func.func @transform_0(%arg0: i32, %arg1: i32) -> (i32, i32, i32) {
    %c0_i32 = arith.constant 0 : i32
    %c0_i32_0 = arith.constant 0 : i32
    return %arg0, %c0_i32, %arg1 : i32, i32, i32
  }
  func.func @transform_1(%arg0: i32, %arg1: i32) -> (i32, i32) {
    %c0_i32 = arith.constant 0 : i32
    %c0_i32_0 = arith.constant 0 : i32
    %c0_i32_1 = arith.constant 0 : i32
    return %c0_i32, %c0_i32_0 : i32, i32
  }
  func.func @transform_2(%arg0: i32, %arg1: i32) -> (i32, i32) {
    %c0_i32 = arith.constant 0 : i32
    %c0_i32_0 = arith.constant 0 : i32
    %c0_i32_1 = arith.constant 0 : i32
    return %c0_i32, %c0_i32_0 : i32, i32
  }
  func.func @transform_3(%arg0: i32, %arg1: i32) -> (i32, i32) {
    %c0_i32 = arith.constant 0 : i32
    %c0_i32_0 = arith.constant 0 : i32
    %c0_i32_1 = arith.constant 0 : i32
    return %c0_i32, %c0_i32_0 : i32, i32
  }
  func.func @transform_4(%arg0: i32, %arg1: i32) -> (i32, i32) {
    %c0_i32 = arith.constant 0 : i32
    %c0_i32_0 = arith.constant 0 : i32
    %c0_i32_1 = arith.constant 0 : i32
    return %c0_i32, %c0_i32_0 : i32, i32
  }
  func.func @transform_5(%arg0: i32, %arg1: i32) -> (i32, i32) {
    %c0_i32 = arith.constant 0 : i32
    %c0_i32_0 = arith.constant 0 : i32
    %c0_i32_1 = arith.constant 0 : i32
    return %c0_i32, %c0_i32_0 : i32, i32
  }
  func.func @transform_6(%arg0: i32, %arg1: i32) -> (i32, i32) {
    %c0_i32 = arith.constant 0 : i32
    %c0_i32_0 = arith.constant 0 : i32
    %c0_i32_1 = arith.constant 0 : i32
    return %c0_i32, %c0_i32_0 : i32, i32
  }
  func.func @transform_7(%arg0: i32, %arg1: i32) -> (i32, i32, i32) {
    %c0_i32 = arith.constant 0 : i32
    %c0_i32_0 = arith.constant 0 : i32
    return %arg0, %c0_i32, %arg1 : i32, i32, i32
  }
}

</mosaic_0001>

<bundles_post_ra>
// kernel: speaker_encoder_forward.1
= control target key start
LH: loop header
LB: loop body
LE: loop exit
PB: predicated region body
PF: predicated region fallthrough
CT: control target
= control target key end

     0   :  { %12 = vsyncpa [#allocation3], 0  ;;  %s1052_s0 = inlined_call_operand.vmem [shape: f32[2,8,128], index: 0, kind: input, shape index: {}]   ;;  %s1053_s1 = inlined_call_operand.vmem [shape: f32[32,8], index: 1, kind: input, shape index: {}]   ;;  %s1054_s2 = inlined_call_operand.vmem [shape: f32[32,1], index: 2, kind: input, shape index: {}]   ;;  %s1055_s3 = inlined_call_operand.vmem [shape: bf16[16,32], index: 3, kind: input, shape index: {}]   ;;  %s1056_s4 = inlined_call_operand.vmem [shape: f32[16,1], index: 4, kind: input, shape index: {}]   ;;  %s1057_s5 = inlined_call_operand.vmem [shape: bf16[8,16], index: 5, kind: input, shape index: {}]   ;;  %s1058_s6 = inlined_call_operand.vmem [shape: f32[8,1], index: 6, kind: input, shape index: {}]   ;;  %s1059_s7 = inlined_call_operand.hbm [shape: f32[2,8,128], index: 7, kind: output, shape index: {}]  }
   0x1   :  { %14 = vsyncpa [#allocation3 + $0x1], 0  ;;  %s904_s24 = smov 0   ;;  %s906_s25 = smov 0  }
   0x2   :  { %s908_s26 = smov 0   ;;  %s910_s27 = smov 0  }
   0x3   :  { %s912_s28 = smov 0   ;;  %s914_s29 = smov 0  }
   0x4 LB: > { %s665_s30 = sadd.s32 4294967295, %s858_s29   ;;  %s666_s8 = sadd.s32 4294967294, %s858_s29   ;;  %s858_s29 = sphi %s914_s29, %s20_s29   ;;  %s854_s28 = sphi %s912_s28, %s1066_s28   ;;  %s850_s27 = sphi %s910_s27, %s1065_s27   ;;  %s846_s26 = sphi %s908_s26, %s1064_s26   ;;  %s842_s25 = sphi %s906_s25, %s1063_s25   ;;  %s838_s24 = sphi %s904_s24, %s1062_s24  }
   0x5   : > { %s32_s9 = sadd.s32 1, %s854_s28  ;;  %s195_s10 = sadd.s32 1, %s846_s26 }
   0x6   : > { %p34_p0 = scmp.ge.s32.totalorder %s32_s9, 2  ;;  %p205_p1 = scmp.ne.s32.totalorder %s846_s26, %s842_s25 }
   0x7   : > { %p206_p2 = scmp.eq.s32.totalorder %s665_s30, 1  ;;  %p211_p3 = scmp.ne.s32.totalorder %s842_s25, %s838_s24 }
   0x8   : > { %s1068_s9 = smov (%p34_p0, %s32_s9), 0  ;;  %p212_p5 = scmp.eq.s32.totalorder %s666_s8, 1 }
   0x9   : > { %p944_p4 = por %p206_p2, %p205_p1  ;;  %s190_s12 = ssub.s32 %s854_s28, %s1068_s9 }
   0xa   : > { %p669_p6 = scmp.ge.s32.totalorder %s858_s29, 1  ;;  %p193_p7 = scmp.eq.s32.totalorder %s190_s12, 0 }
   0xb   : > { %p951_p8 = por %p212_p5, %p211_p3  ;;  %p258_p9 = scmp.lt.s32.totalorder %s858_s29, 3 }
   0xc   : > { %s957_s14 = scalar_select %p193_p7, %s846_s26, %s195_s10  }
   0xd   : > { %p259_p10 = pnand %p669_p6, %p258_p9 }
   0xe   : > { %p292_p11 = scmp.lt.s32.totalorder (!%p259_p10), %s850_s27, 1  ;;  %s289_s21 = sand.u32 (!%p259_p10), 1, %s842_s25  }
   0xf   : > { %262 = sbr.rel (%p259_p10) target bundleno = 720 (0x2d0), region = 48  ;;  %s680_s22 = sshll.u32 (!%p259_p10), %s850_s27, 7 }
  0x10   : > { %s1012_s12 = scalar_lea.hbm (!%p259_p10), %s1059_s7, %s680_s22  ;;  %s580_s15 = scalar_lea.sflag (!%p259_p10), [#allocation3], %s289_s21 }
  0x14   : > { %v301_v0 = vld [vmem:[%s1053_s1] sm:$0xff]  ;;  %vm329_vm0 = vcmask 64512   ;;  %v860_v1 = vmov 0   ;;  %v307_v2 = vld [vmem:[%s1054_s2 + $0x10] sm:$0xff]  ;;  %s293_s19 = scalar_select %p292_p11, %s850_s27, 1  ;;  %v308_v4 = vld [vmem:[%s1054_s2 + $0x18] sm:$0xff] }
  0x15   : > { %695 = vmatprep.mubr.msk.f32.mxu0 %vm329_vm0, %v301_v0  ;;  %773 = vset.pattern.permute.xlu0 %v860_v1  ;;  %v305_v3 = vld [vmem:[%s1054_s2] sm:$0xff]  ;;  %v306_v5 = vld [vmem:[%s1054_s2 + $0x8] sm:$0xff]  ;;  %v303_v8 = vld [vmem:[%s1053_s1 + $0x10] sm:$0xff]  ;;  %v861_v13 = vmov 0.0   ;;  %vm862_vm1 = vmmov 0   ;;  %vm456_vm2 = vcmask 261120  }
  0x16   : > { %321 = vperm.xlu0 %773, %v307_v2   ;;  %774 = vset.pattern.permute.xlu1 %v860_v1  ;;  %s671_s30 = sshll.u32 %s293_s19, 3  ;;  %v302_v7 = vld [vmem:[%s1053_s1 + $0x8] sm:$0xff]  ;;  %v439_v9 = vld [vmem:[%s1056_s4] sm:$0xff]  ;;  %v304_v11 = vld [vmem:[%s1053_s1 + $0x18] sm:$0xff]  ;;  %vm532_vm3 = vcmask 130048   ;;  %s670_s19 = sshll.u32 %s289_s21, 3 }
  0x17   : > { %311 = vperm.xlu1 %774, %v305_v3   ;;  %s298_s16 = scalar_lea.vmem %s1052_s0, %s671_s30  ;;  %v440_v10 = vld [vmem:[%s1056_s4 + $0x8] sm:$0xff]  ;;  %v526_v12 = vld [vmem:[%s1058_s6] sm:$0xff]  ;;  %701 = vmatprep.subr.bf16.mxu1 %v861_v13  ;;  %s291_s23 = scalar_lea.vmem [#allocation2], %s670_s19 }
  0x18   : > { %v300_v6 = vld [vmem:[%s298_s16] sm:$0xff]  ;;  %705 = vmatprep.mubr.msk.bf16.mxu1 %vm862_vm1, %v861_v13  ;;  %s594_s8 = sshll.u32 %s291_s23, 4  ;;  %s863_s27 = smov [#allocation2]   ;;  %s595_s8 = int_to_ptr.vmem [resolvable:$true] %s594_s8 }
  0x19   : > { %693 = vmatprep.subr.mxu0 %v300_v6  ;;  %v775_v36 = vld [vmem:[%s1055_s3] sm:$0xff]   ;;  %s782_s16 = scalar_lea.vmem %s595_s8, 128  ;;  %s786_s17 = sshll.u32 %s863_s27, 4  ;;  %s787_s17 = int_to_ptr.vmem [resolvable:$false] %s786_s17 }
  0x1a   : > { %326 = vperm.xlu0 %773, %v308_v4   ;;  %694 = vmatpush3.msra.mxu0 %v300_v6  ;;  %p783_p12 = scmp.ne.s32.totalorder %s595_s8, %s782_s16  ;;  %s788_s18 = scalar_lea.vmem %s787_s17, 256 }
  0x1b   : > { %316 = vperm.xlu1 %774, %v306_v5   ;;  %696 = vmatmul.mubr.msk.f32.vlgmr.msra.gmra.mxu0 %vm329_vm0, %v302_v7  ;;  %v524_v5 = vld [vmem:[%s1057_s5] sm:$0xf]  ;;  %p789_p1 = scmp.lt.s32.totalorder %s595_s8, %s787_s17  ;;  %p790_p2 = scmp.lt.s32.totalorder %s788_s18, %s782_s16 }
  0x1c   : > { %698 = vmatprep.mubr.msk.f32.mxu0 %vm329_vm0, %v303_v8  ;;  %709 = vmatprep.subr.bf16.mxu0 %v861_v13  ;;  %p784_p13 = pnand %p783_p12, %p944_p4 }
  0x1d   : > { %p791_p3 = por %p790_p2, %p789_p1 }
  0x1e   : > { %443 = vperm.xlu0 %773, %v439_v9   ;;  %p785_p0 = pneg %p784_p13 }
  0x1f   : > { %448 = vperm.xlu1 %774, %v440_v10   ;;  %699 = vmatmul.mubr.msk.f32.gmra.mxu0 %vm329_vm0, %v304_v11 }
  0x20   : > { %711 = vmatprep.mubr.msk.bf16.mxu0 %vm862_vm1, %v861_v13  ;;  %p792_p5 = pnand %p791_p3, %p785_p0 }
  0x22   : > { %529 = vperm.xlu0 %773, %v526_v12  }
  0x91   : > { %v322_v14 = vpop.permute.xlu0 %321 }
  0x92   : > { %v312_v15 = vpop.permute.xlu1 %311 }
  0x95   : > { %v327_v18 = vpop.permute.xlu0 %326 }
  0x96   : > { %v317_v19 = vpop.permute.xlu1 %316 }
  0x99   : > { %v444_v39 = vpop.permute.xlu0 %443 }
  0x9a   : > { %v449_v40 = vpop.permute.xlu1 %448 }
  0x9d   : > { %v530_v6 = vpop.permute.xlu0 %529 }
  0xdb   : > { %v697_v16 = vpop.f32.mrf.mxu0 }
  0xdc   : > { %v414_v24 = vadd.f32 %v697_v16, %v317_v19 }
  0xdd   : > { %v408_v17 = vpop.f32.mrf.mxu0 }
  0xde   : > { %v409_v21 = vadd.f32 %v408_v17, %v312_v15  ;;  %v428_v29 = vmul.f32 0.2, %v414_v24 }
  0xdf   : > { %v700_v20 = vpop.f32.mrf.mxu0 }
  0xe0   : > { %v424_v22 = vadd.f32 %v700_v20, %v327_v18  ;;  %v427_v27 = vmul.f32 0.2, %v409_v21  ;;  %v432_v34 = vmax.f32 %v414_v24, %v428_v29 }
  0xe1   : > { %v418_v23 = vpop.f32.mrf.mxu0 }
  0xe2   : > { %v430_v25 = vmul.f32 0.2, %v424_v22  ;;  %v419_v26 = vadd.f32 %v418_v23, %v322_v14  ;;  %v431_v32 = vmax.f32 %v409_v21, %v427_v27 }
  0xe4   : > { %v429_v28 = vmul.f32 0.2, %v419_v26  ;;  %v434_v30 = vmax.f32 %v424_v22, %v430_v25  ;;  %v437_v35 = vpack.c.bf16 %v432_v34, %v431_v32 }
  0xe6   : > { %v433_v31 = vmax.f32 %v419_v26, %v429_v28 }
  0xe8   : > { %v438_v33 = vpack.c.bf16 %v434_v30, %v433_v31 }
  0xea   : > { %702 = vmatpush3.bf16.msra.mxu1 %v438_v33 }
  0xeb   : > { %703 = vmatprep.subr.bf16.mxu1 %v861_v13 }
  0xee   : > { %704 = vmatpush3.bf16.msra.mxu1 %v437_v35 }
  0xf1   : > { %706 = vmatmul.mubr.msk.bf16.vlgmr.msra.gmra.mxu1 %vm456_vm2, %v775_v36 }
 0x1b1   : > { %v494_v37 = vpop.f32.mrf.mxu1 }
 0x1b2   : > { %v495_v42 = vadd.f32 %v494_v37, %v444_v39 }
 0x1b3   : > { %v707_v38 = vpop.f32.mrf.mxu1 }
 0x1b5   : > { %v497_v41 = vpop.f32.mrf.mxu1 }
 0x1b6   : > { %v498_v43 = vadd.f32 %v497_v41, %v449_v40 }
 0x1b7   : > { %v708_v44 = vpop.f32.mrf.mxu1 }
 0x1b8   : > { %v501_v45 = vmax.f32 %v495_v42, %v498_v43 }
 0x1ba   : > { %v502_v46 = vrot.slane %v501_v45, 4 }
 0x1bc   : > { %v503_v47 = vmax.f32 %v501_v45, %v502_v46 }
 0x1be   : > { %v504_v48 = vrot.slane %v503_v47, 2 }
 0x1c0   : > { %v505_v49 = vmax.f32 %v503_v47, %v504_v48 }
 0x1c2   : > { %v506_v50 = vrot.slane %v505_v49, 1 }
 0x1c4   : > { %v507_v51 = vmax.f32 %v505_v49, %v506_v50 }
 0x1c6   : > { %v508_v52 = vsub.f32 %v495_v42, %v507_v51  ;;  %v509_v53 = vsub.f32 %v498_v43, %v507_v51 }
 0x1c8   : > { %v510_v54 = vmul.f32 1.442695, %v508_v52  ;;  %v512_v55 = vmul.f32 1.442695, %v509_v53 }
 0x1ca   : > { %776 = vpow2.f32 %v510_v54 }
 0x1cb   : > { %778 = vpow2.f32 %v512_v55 }
 0x1d7   : > { %v777_v56 = vpop.eup %776 }
 0x1d8   : > { %v779_v57 = vpop.eup %778 }
 0x1d9   : > { %v514_v58 = vadd.f32 %v779_v57, %v777_v56 }
 0x1db   : > { %v515_v59 = vrot.slane %v514_v58, 4 }
 0x1dd   : > { %v516_v60 = vadd.f32 %v515_v59, %v514_v58 }
 0x1df   : > { %v517_v61 = vrot.slane %v516_v60, 2 }
 0x1e1   : > { %v518_v62 = vadd.f32 %v517_v61, %v516_v60 }
 0x1e3   : > { %v519_v63 = vrot.slane %v518_v62, 1 }
 0x1e5   : > { %v520_v0 = vadd.f32 %v519_v63, %v518_v62 }
 0x1e7   : > { %780 = vrcp.f32 %v520_v0 }
 0x1f4   : > { %v781_v1 = vpop.eup %780 }
 0x1f5   : > { %v522_v2 = vmul.f32 %v781_v1, %v777_v56  ;;  %v523_v3 = vmul.f32 %v781_v1, %v779_v57 }
 0x1f7   : > { %v525_v4 = vpack.c.bf16 %v523_v3, %v522_v2 }
 0x1f9   : > { %710 = vmatpush3.bf16.msra.mxu0 %v525_v4 }
 0x1fc   : > { %712 = vmatmul.mubr.msk.bf16.vlgmr.msra.gmra.mxu0 %vm532_vm3, %v524_v5 }
 0x2bc   : > { %v570_v7 = vpop.f32.mrf.mxu0 }
 0x2bd   : > { %v571_v8 = vadd.f32 %v570_v7, %v530_v6 }
 0x2be   : > { %v713_v9 = vpop.f32.mrf.mxu0 }
 0x2bf   : > { %v576_v10 = vmul.f32 0.2, %v571_v8 }
 0x2c0   : > { %v573_v11 = vpop.f32.mrf.mxu0 }
 0x2c1   : > { %v577_v12 = vmax.f32 %v571_v8, %v576_v10 }
 0x2c2   : > { %v714_v13 = vpop.f32.mrf.mxu0 }
 0x2c3   : > { %578 = vst [vmem:[%s291_s23] sm:$0xff] %v577_v12 }
 0x2c4   : > { %795 = shalt.err (!%p792_p5)
}
 0x2c5   : > { %s796_s20 = scalar_lea.hbm %s1012_s12, 128  ;;  %s800_s22 = scalar_lea.hbm %s1059_s7, 256 }
 0x2c6   : > { %p797_p6 = scmp.ne.s32.totalorder %s1012_s12, %s796_s20  ;;  %p801_p10 = scmp.lt.s32.totalorder %s1012_s12, %s1059_s7 }
 0x2c7   : > { %p802_p11 = scmp.lt.s32.totalorder %s800_s22, %s796_s20 }
 0x2c8   : > { %p798_p7 = pnand %p797_p6, %p944_p4 }
 0x2c9   : > { %p803_p12 = por %p802_p11, %p801_p10 }
 0x2ca   : > { %p799_p9 = pneg %p798_p7 }
 0x2cc   : > { %p804_p13 = pnand %p803_p12, %p799_p9 }
 0x2ce   : > { %807 = shalt.err (!%p804_p13)
}
 0x2cf   : > { %715 = dma.vmem_to_hbm [thread:$0]  (%p944_p4), %s595_s8, 128, %s1012_s12, %s580_s15  }
 0x2d0 PF: > { %p721_p0 = scmp.ge.s32.totalorder %s858_s29, 2  ;;  %s606_s10 = sand.u32 1, %s838_s24  }
 0x2d1   : > { %s607_s16 = scalar_lea.sflag [#allocation3], %s606_s10 }
 0x2d2   : > { %p718_p1 = pnand %p721_p0, %p951_p8 }
 0x2d4   : > { %p719_p2 = pneg %p718_p1 }
 0x2d6   : > { %833 = dma.done.wait (%p719_p2), %s607_s16, 128  }
 0x2d7   : > { %835 = vsyncadd (%p719_p2), %s607_s16, 4294967168  ;;  %s20_s29 = sadd.s32 1, %s858_s29   ;;  %s1062_s24 = smov %s842_s25 }
 0x2d8   : > { %p17_p3 = scmp.ge.s32.totalorder %s20_s29, 4   ;;  %s1063_s25 = smov %s846_s26 }
 0x2d9   : > { %s1064_s26 = smov %s957_s14  ;;  %s1065_s27 = smov %s854_s28 }
 0x2da   : > { %s1066_s28 = smov %s1068_s9  ;;  %19 = sbr.rel (!%p17_p3) target bundleno = 4 (0x4), region = 83 }
 0x2df   :  { %612 = vsyncpa [#allocation3], 1 }
 0x2e0   :  { %614 = vsyncpa [#allocation3 + $0x1], 1 }

</bundles_post_ra>
